<compile_context>
chip_gen: v6e
topology: v6e:2x2x1
jax: 0.10.0
libtpu: 0.0.40
codegen_flags: <defaults>
</compile_context>

<pallas_src>
import functools

import jax
import jax.numpy as jnp
from jax.experimental import pallas as pl
from jax.experimental.pallas import tpu as pltpu


def _round_up(x, m):
    return ((x + m - 1) // m) * m


def _conv1d_kernel(x_ref, w_ref, b_ref, o_ref, *, stride):
    """One (batch, cout-tile) grid step.

    x_ref: (1, Lp, Din_p)  zero-padded input rows for this batch element
    w_ref: (K, Din_p, Ct)  packed weights for this cout tile
    b_ref: (1, Ct)         bias for this cout tile (f32)
    o_ref: (1, Lo, Ct)     output rows for this batch element / cout tile
    """
    K = w_ref.shape[0]
    lo = o_ref.shape[1]
    ct = o_ref.shape[2]

    acc = jnp.zeros((lo, ct), jnp.float32)
    for j in range(K):  # K is small & static -> unrolled taps, one fat matmul each
        if stride == 1:
            xj = x_ref[0, pl.ds(j, lo), :]
        else:
            xj = x_ref[0, pl.ds(j, lo, stride), :]
        acc = acc + jnp.dot(xj, w_ref[j], preferred_element_type=jnp.float32)
    o_ref[0] = (acc + b_ref[...]).astype(o_ref.dtype)


def _pick_cout_tile(c_pad, batch):
    """Bound the resident weight block and keep >=2 grid steps for v7x's 2 TCs."""
    if c_pad <= 128:
        return c_pad
    if batch == 1:
        # split channels so a single-batch call still has >=2 parallel steps
        return 256 if (c_pad % 256 == 0 and c_pad > 256) else 128
    if c_pad <= 512:
        return c_pad
    return 256 if c_pad % 256 == 0 else 128


@functools.partial(jax.jit, static_argnames=("stride", "padding", "use_bf16"))
def conv1d_forward(x, weight, bias=None, *, stride=1, padding=0, use_bf16=False):
    """Pallas TPU equivalent of Conv1D.forward (transpose -> nn.Conv1d -> transpose).

    x:      (B, L, Din)     channels-last input
    weight: (Dout, Din, K)  PyTorch nn.Conv1d weight layout
    bias:   (Dout,) or None
    returns (B, L_out, Dout) with L_out = (L + 2*padding - K)//stride + 1
    """
    B, L, Din = x.shape
    Dout, Din_w, K = weight.shape
    assert Din_w == Din
    L_out = (L + 2 * padding - K) // stride + 1
    assert L_out >= 1

    cdtype = jnp.bfloat16 if use_bf16 else jnp.float32
    csize = jnp.dtype(cdtype).itemsize

    # ---- padded sizes: 128-lane-dense contraction & output channels, 8-aligned rows
    Din_p = _round_up(Din, 128)
    Cpad = _round_up(Dout, 128)
    Lout_p = _round_up(L_out, 8)
    # rows of padded input the kernel may touch: j + t*stride, j < K, t < Lout_p
    Lp = _round_up(max(L + 2 * padding, (K - 1) + (Lout_p - 1) * stride + 1), 8)

    # ---- input: zero padding only (seq halo + channel lanes) — no im2col ----
    xp = jnp.pad(x.astype(cdtype),
                 ((0, 0), (padding, Lp - L - padding), (0, Din_p - Din)))

    # ---- weights packed once: (K, Din_p, Cpad); bias (1, Cpad) in f32 ----
    w_pk = jnp.transpose(weight, (2, 1, 0)).astype(cdtype)          # (K, Din, Dout)
    w_pk = jnp.pad(w_pk, ((0, 0), (0, Din_p - Din), (0, Cpad - Dout)))
    b_vec = jnp.zeros((Dout,), jnp.float32) if bias is None else bias.astype(jnp.float32)
    b_pk = jnp.pad(b_vec, (0, Cpad - Dout)).reshape(1, Cpad)

    # ---- cout tiling + grid ----
    Ct = _pick_cout_tile(Cpad, B)
    n_ct = Cpad // Ct
    grid = (B, n_ct)

    # ---- VMEM budget (per-generation cap) ----
    x_blk = Lp * Din_p * csize
    w_blk = K * Din_p * Ct * csize
    o_blk = Lout_p * Ct * 4
    # Weights/bias are grid-invariant when n_ct == 1; single-buffer them only when
    # they are big enough to matter (multi-MiB) — halves their resident footprint
    # under v7x's 64 MiB VMEM.
    single_buf_w = (n_ct == 1 and w_blk >= (4 << 20))
    wbuf = 1 if single_buf_w else 2
    need = 2 * x_blk + wbuf * w_blk + 2 * Ct * 4 + 2 * o_blk + Lout_p * Ct * 4
    try:
        vmem_cap = pltpu.get_tpu_info().vmem_capacity_bytes
    except Exception:
        vmem_cap = 64 * 2**20           # assume the smallest (v7x) if unknown
    vmem_limit = int(min(max(2 * need + (4 << 20), 16 << 20), (3 * vmem_cap) // 4))

    if single_buf_w:
        w_spec = pl.BlockSpec((K, Din_p, Ct), lambda b, c: (0, 0, c),
                              pipeline_mode=pl.Buffered(1))
        b_spec = pl.BlockSpec((1, Ct), lambda b, c: (0, c),
                              pipeline_mode=pl.Buffered(1))
    else:
        w_spec = pl.BlockSpec((K, Din_p, Ct), lambda b, c: (0, 0, c))
        b_spec = pl.BlockSpec((1, Ct), lambda b, c: (0, c))

    cost = pl.CostEstimate(
        flops=2 * B * Lout_p * K * Din_p * Cpad,
        transcendentals=0,
        bytes_accessed=int(xp.size * csize + w_pk.size * csize
                           + b_pk.size * 4 + B * Lout_p * Cpad * 4),
    )

    kernel = functools.partial(_conv1d_kernel, stride=stride)

    out = pl.pallas_call(
        kernel,
        out_shape=jax.ShapeDtypeStruct((B, Lout_p, Cpad), jnp.float32),
        grid_spec=pltpu.PrefetchScalarGridSpec(
            num_scalar_prefetch=0,
            grid=grid,
            in_specs=[
                pl.BlockSpec((1, Lp, Din_p), lambda b, c: (b, 0, 0)),
                w_spec,
                b_spec,
            ],
            out_specs=pl.BlockSpec((1, Lout_p, Ct), lambda b, c: (b, 0, c)),
        ),
        compiler_params=pltpu.CompilerParams(
            dimension_semantics=("parallel", "parallel"),
            vmem_limit_bytes=vmem_limit,
        ),
        cost_estimate=cost,
    )(xp, w_pk, b_pk)

    if L_out == Lout_p and Dout == Cpad:
        return out
    return out[:, :L_out, :Dout]


def reference_forward(x, weight, bias=None, *, stride=1, padding=0):
    """Pure-JAX reference mirroring the PyTorch forward (transpose -> Conv1d -> transpose)."""
    B, L, Din = x.shape
    Dout, _, K = weight.shape
    L_out = (L + 2 * padding - K) // stride + 1
    xp = jnp.pad(x.astype(jnp.float32), ((0, 0), (padding, padding), (0, 0)))
    span = stride * (L_out - 1) + 1
    out = jnp.zeros((B, L_out, Dout), jnp.float32)
    for j in range(K):
        xj = xp[:, j:j + span:stride, :]
        out = out + jnp.einsum('bld,od->blo', xj, weight[:, :, j].astype(jnp.float32))
    if bias is not None:
        out = out + bias.astype(jnp.float32)[None, None, :]
    return out


if __name__ == "__main__":
    key = jax.random.PRNGKey(0)

    configs = [
        # (B, L, in_dim, out_dim, kernel_size, stride, padding, use_bf16, tol)
        (2, 16, 32, 64, 3, 1, 1, False, 1e-4),    # "same"-style conv used in the model
        (2, 16, 32, 64, 1, 1, 0, False, 1e-4),    # module defaults: pointwise conv
        (1, 16, 32, 256, 3, 1, 1, False, 1e-4),   # B=1 -> cout split keeps >=2 grid steps
        (2, 16, 32, 128, 3, 1, 1, False, 1e-4),   # Dout already lane-aligned (no slice)
        (2, 16, 32, 64, 3, 1, 1, True, 2e-2),     # bf16 MXU operands, f32 accumulation
    ]

    for (B, L, Din, Dout, K, stride, padding, use_bf16, tol) in configs:
        key, kx, kw, kb = jax.random.split(key, 4)
        x = 0.1 * jax.random.normal(kx, (B, L, Din), jnp.float32)
        w = 0.1 * jax.random.normal(kw, (Dout, Din, K), jnp.float32)
        b = 0.1 * jax.random.normal(kb, (Dout,), jnp.float32)

        out = conv1d_forward(x, w, b, stride=stride, padding=padding, use_bf16=use_bf16)
        out = jax.block_until_ready(out)
        ref = reference_forward(x, w, b, stride=stride, padding=padding)

        L_out = (L + 2 * padding - K) // stride + 1
        assert out.shape == (B, L_out, Dout), out.shape
        err = float(jnp.max(jnp.abs(out - ref)))
        assert err < tol, (
            f"max err {err} for config {(B, L, Din, Dout, K, stride, padding, use_bf16)}")

    print("KERNEL_OK")
</pallas_src>

<mosaic_0001>
module attributes {stable_mosaic.version = 11 : i64} {
  func.func @_conv1d_kernel(%arg0: i32, %arg1: i32, %arg2: memref<1x24x128xf32, #tpu.memory_space<vmem>>, %arg3: memref<3x128x128xf32, #tpu.memory_space<vmem>>, %arg4: memref<1x128xf32, #tpu.memory_space<vmem>>, %arg5: memref<1x16x128xf32, #tpu.memory_space<vmem>>) attributes {dimension_semantics = [#tpu.dimension_semantics<parallel>, #tpu.dimension_semantics<parallel>], iteration_bounds = array<i64: 2, 1>, scalar_prefetch = 0 : i64, scratch_operands = 0 : i64, tpu.core_type = #tpu.core_type<tc>, window_params = [{transform_indices = @transform_0, window_bounds = array<i64: 1, 24, 128>}, {transform_indices = @transform_1, window_bounds = array<i64: 3, 128, 128>}, {transform_indices = @transform_2, window_bounds = array<i64: 1, 128>}, {transform_indices = @transform_3, window_bounds = array<i64: 1, 16, 128>}]} {
    %cst = arith.constant 0.000000e+00 : f32
    %0 = vector.broadcast %cst : f32 to vector<16x128xf32>
    %c0 = arith.constant 0 : index
    %c0_0 = arith.constant 0 : index
    %c0_1 = arith.constant 0 : index
    %1 = vector.load %arg2[%c0, %c0_0, %c0_1] : memref<1x24x128xf32, #tpu.memory_space<vmem>>, vector<1x16x128xf32>
    %2 = vector.shape_cast %1 : vector<1x16x128xf32> to vector<16x128xf32>
    %c0_2 = arith.constant 0 : index
    %c0_3 = arith.constant 0 : index
    %c0_4 = arith.constant 0 : index
    %3 = vector.load %arg3[%c0_2, %c0_3, %c0_4] : memref<3x128x128xf32, #tpu.memory_space<vmem>>, vector<1x128x128xf32>
    %4 = vector.shape_cast %3 : vector<1x128x128xf32> to vector<128x128xf32>
    %cst_5 = arith.constant dense<0.000000e+00> : vector<16x128xf32>
    %5 = tpu.matmul %2, %4, %cst_5 {dimension_numbers = #tpu.dot_dimension_numbers<[1], [0], [0], [1], [0, 0, 1, 1], [], []>} : vector<16x128xf32>, vector<128x128xf32>, vector<16x128xf32> -> vector<16x128xf32>
    %6 = arith.addf %0, %5 : vector<16x128xf32>
    %c0_6 = arith.constant 0 : index
    %c1 = arith.constant 1 : index
    %c0_7 = arith.constant 0 : index
    %7 = vector.load %arg2[%c0_6, %c1, %c0_7] : memref<1x24x128xf32, #tpu.memory_space<vmem>>, vector<1x16x128xf32>
    %8 = vector.shape_cast %7 : vector<1x16x128xf32> to vector<16x128xf32>
    %c1_8 = arith.constant 1 : index
    %c0_9 = arith.constant 0 : index
    %c0_10 = arith.constant 0 : index
    %9 = vector.load %arg3[%c1_8, %c0_9, %c0_10] : memref<3x128x128xf32, #tpu.memory_space<vmem>>, vector<1x128x128xf32>
    %10 = vector.shape_cast %9 : vector<1x128x128xf32> to vector<128x128xf32>
    %cst_11 = arith.constant dense<0.000000e+00> : vector<16x128xf32>
    %11 = tpu.matmul %8, %10, %cst_11 {dimension_numbers = #tpu.dot_dimension_numbers<[1], [0], [0], [1], [0, 0, 1, 1], [], []>} : vector<16x128xf32>, vector<128x128xf32>, vector<16x128xf32> -> vector<16x128xf32>
    %12 = arith.addf %6, %11 : vector<16x128xf32>
    %c0_12 = arith.constant 0 : index
    %c2 = arith.constant 2 : index
    %c0_13 = arith.constant 0 : index
    %13 = vector.load %arg2[%c0_12, %c2, %c0_13] : memref<1x24x128xf32, #tpu.memory_space<vmem>>, vector<1x16x128xf32>
    %14 = vector.shape_cast %13 : vector<1x16x128xf32> to vector<16x128xf32>
    %c2_14 = arith.constant 2 : index
    %c0_15 = arith.constant 0 : index
    %c0_16 = arith.constant 0 : index
    %15 = vector.load %arg3[%c2_14, %c0_15, %c0_16] : memref<3x128x128xf32, #tpu.memory_space<vmem>>, vector<1x128x128xf32>
    %16 = vector.shape_cast %15 : vector<1x128x128xf32> to vector<128x128xf32>
    %cst_17 = arith.constant dense<0.000000e+00> : vector<16x128xf32>
    %17 = tpu.matmul %14, %16, %cst_17 {dimension_numbers = #tpu.dot_dimension_numbers<[1], [0], [0], [1], [0, 0, 1, 1], [], []>} : vector<16x128xf32>, vector<128x128xf32>, vector<16x128xf32> -> vector<16x128xf32>
    %18 = arith.addf %12, %17 : vector<16x128xf32>
    %c0_18 = arith.constant 0 : index
    %c0_19 = arith.constant 0 : index
    %19 = vector.load %arg4[%c0_18, %c0_19] : memref<1x128xf32, #tpu.memory_space<vmem>>, vector<1x128xf32>
    %20 = vector.broadcast %19 : vector<1x128xf32> to vector<16x128xf32>
    %21 = arith.addf %18, %20 : vector<16x128xf32>
    %c0_20 = arith.constant 0 : index
    %c0_21 = arith.constant 0 : index
    %c0_22 = arith.constant 0 : index
    %22 = vector.load %arg5[%c0_20, %c0_21, %c0_22] : memref<1x16x128xf32, #tpu.memory_space<vmem>>, vector<1x16x128xf32>
    %23 = vector.shape_cast %22 : vector<1x16x128xf32> to vector<16x128xf32>
    %24 = vector.shape_cast %21 : vector<16x128xf32> to vector<1x16x128xf32>
    tpu.vector_store %arg5[%c0_20, %c0_21, %c0_22], %24 {strides = array<i32>} : memref<1x16x128xf32, #tpu.memory_space<vmem>>, vector<1x16x128xf32>,
    return
  }
  func.func @transform_0(%arg0: i32, %arg1: i32) -> (i32, i32, i32) {
    %c0_i32 = arith.constant 0 : i32
    %c0_i32_0 = arith.constant 0 : i32
    %c0_i32_1 = arith.constant 0 : i32
    return %arg0, %c0_i32, %c0_i32_0 : i32, i32, i32
  }
  func.func @transform_1(%arg0: i32, %arg1: i32) -> (i32, i32, i32) {
    %c0_i32 = arith.constant 0 : i32
    %c0_i32_0 = arith.constant 0 : i32
    %c0_i32_1 = arith.constant 0 : i32
    return %c0_i32, %c0_i32_0, %arg1 : i32, i32, i32
  }
  func.func @transform_2(%arg0: i32, %arg1: i32) -> (i32, i32) {
    %c0_i32 = arith.constant 0 : i32
    %c0_i32_0 = arith.constant 0 : i32
    return %c0_i32, %arg1 : i32, i32
  }
  func.func @transform_3(%arg0: i32, %arg1: i32) -> (i32, i32, i32) {
    %c0_i32 = arith.constant 0 : i32
    %c0_i32_0 = arith.constant 0 : i32
    return %arg0, %c0_i32, %arg1 : i32, i32, i32
  }
}

</mosaic_0001>

<bundles_post_ra>
// kernel: conv1d_forward.1
= control target key start
LH: loop header
LB: loop body
LE: loop exit
PB: predicated region body
PF: predicated region fallthrough
CT: control target
= control target key end

     0   :  { %8 = vsyncpa [#allocation3], 0  ;;  %s1257_s0 = inlined_call_operand.vmem [shape: f32[2,24,128], index: 0, kind: input, shape index: {}]   ;;  %s1258_s1 = inlined_call_operand.vmem [shape: f32[3,128,128], index: 1, kind: input, shape index: {}]   ;;  %s1259_s2 = inlined_call_operand.vmem [shape: f32[1,128], index: 2, kind: input, shape index: {}]   ;;  %s1260_s3 = inlined_call_operand.hbm [shape: f32[2,16,128], index: 3, kind: output, shape index: {}]  }
   0x1   :  { %10 = vsyncpa [#allocation3 + $0x1], 0  ;;  %s988_s12 = smov 0   ;;  %s990_s13 = smov 0  }
   0x2   :  { %s992_s14 = smov 0   ;;  %s994_s15 = smov 0  }
   0x3   :  { %s996_s16 = smov 0   ;;  %s998_s17 = smov 0  }
   0x4 LB: > { %s622_s18 = sadd.s32 4294967295, %s963_s17   ;;  %s623_s19 = sadd.s32 4294967294, %s963_s17   ;;  %s963_s17 = sphi %s998_s17, %s16_s17   ;;  %s959_s16 = sphi %s996_s16, %s1267_s16   ;;  %s955_s15 = sphi %s994_s15, %s1266_s15   ;;  %s951_s14 = sphi %s992_s14, %s1265_s14   ;;  %s947_s13 = sphi %s990_s13, %s1264_s13   ;;  %s943_s12 = sphi %s988_s12, %s1263_s12  }
   0x5   : > { %s28_s20 = sadd.s32 1, %s959_s16  ;;  %s115_s21 = sadd.s32 1, %s951_s14 }
   0x6   : > { %p30_p0 = scmp.ge.s32.totalorder %s28_s20, 2  ;;  %p125_p1 = scmp.ne.s32.totalorder %s951_s14, %s947_s13 }
   0x7   : > { %p126_p2 = scmp.eq.s32.totalorder %s622_s18, 1  ;;  %p131_p3 = scmp.ne.s32.totalorder %s947_s13, %s943_s12 }
   0x8   : > { %s1269_s20 = smov (%p30_p0, %s28_s20), 0  ;;  %p132_p5 = scmp.eq.s32.totalorder %s623_s19, 1 }
   0x9   : > { %p1028_p4 = por %p126_p2, %p125_p1  ;;  %s110_s23 = ssub.s32 %s959_s16, %s1269_s20 }
   0xa   : > { %p628_p6 = scmp.ge.s32.totalorder %s963_s17, 1  ;;  %p113_p7 = scmp.eq.s32.totalorder %s110_s23, 0 }
   0xb   : > { %p1035_p8 = por %p132_p5, %p131_p3  ;;  %p171_p9 = scmp.lt.s32.totalorder %s963_s17, 3 }
   0xc   : > { %s1041_s25 = scalar_select %p113_p7, %s951_s14, %s115_s21  }
   0xd   : > { %p172_p10 = pnand %p628_p6, %p171_p9 }
   0xe   : > { %p202_p11 = scmp.lt.s32.totalorder (!%p172_p10), %s955_s15, 1  ;;  %s199_s27 = sand.u32 (!%p172_p10), 1, %s947_s13  }
   0xf   : > { %175 = sbr.rel (%p172_p10) target bundleno = 300 (0x12c), region = 32  ;;  %s669_s5 = sshll.u32 (!%p172_p10), %s955_s15, 8 }
  0x10   : > { %s1210_s8 = scalar_lea.hbm (!%p172_p10), %s1260_s3, %s669_s5 }
  0x14   : > { %v646_v0 = vld [vmem:[%s1258_s1 + $0xf8] sm:$0xff]  ;;  %v645_v2 = vld [vmem:[%s1258_s1 + $0xf0] sm:$0xff]  ;;  %v644_v4 = vld [vmem:[%s1258_s1 + $0xe8] sm:$0xff]  ;;  %s203_s9 = scalar_select %p202_p11, %s955_s15, 1 }
  0x15   : > { %v231_v1 = vld [vmem:[%s1258_s1 + $0x78] sm:$0xff]  ;;  %724 = vmatprep.subr.mxu0 %v646_v0  ;;  %v230_v3 = vld [vmem:[%s1258_s1 + $0x70] sm:$0xff]  ;;  %v229_v5 = vld [vmem:[%s1258_s1 + $0x68] sm:$0xff]  ;;  %s965_s15 = smov [#allocation2]  }
  0x16   : > { %759 = vmatprep.subr.mxu1 %v231_v1  ;;  %725 = vmatpush3.msra.mxu0 %v646_v0  ;;  %v643_v6 = vld [vmem:[%s1258_s1 + $0xe0] sm:$0xff]  ;;  %v642_v8 = vld [vmem:[%s1258_s1 + $0xd8] sm:$0xff]  ;;  %v641_v10 = vld [vmem:[%s1258_s1 + $0xd0] sm:$0xff]  ;;  %s829_s28 = smul.u32 24, %s203_s9  ;;  %s1212_s9 = scalar_lea.sflag [#allocation3], %s199_s27 }
  0x17   : > { %760 = vmatpush3.msra.mxu1 %v231_v1  ;;  %726 = vmatprep.subr.mxu0 %v645_v2  ;;  %v228_v7 = vld [vmem:[%s1258_s1 + $0x60] sm:$0xff]  ;;  %v227_v9 = vld [vmem:[%s1258_s1 + $0x58] sm:$0xff]  ;;  %v226_v11 = vld [vmem:[%s1258_s1 + $0x50] sm:$0xff]  ;;  %s891_s11 = sshll.u32 %s965_s15, 4  ;;  %s892_s11 = int_to_ptr.vmem [resolvable:$false] %s891_s11 }
  0x18   : > { %761 = vmatprep.subr.mxu1 %v230_v3  ;;  %727 = vmatpush3.msra.mxu0 %v645_v2  ;;  %v640_v12 = vld [vmem:[%s1258_s1 + $0xc8] sm:$0xff]  ;;  %v639_v14 = vld [vmem:[%s1258_s1 + $0xc0] sm:$0xff]  ;;  %v638_v16 = vld [vmem:[%s1258_s1 + $0xb8] sm:$0xff]  ;;  %s1138_s18 = scalar_lea.vmem %s1257_s0, %s829_s28  ;;  %s629_s28 = sshll.u32 %s199_s27, 4 }
  0x19   : > { %762 = vmatpush3.msra.mxu1 %v230_v3  ;;  %728 = vmatprep.subr.mxu0 %v644_v4  ;;  %v225_v13 = vld [vmem:[%s1258_s1 + $0x48] sm:$0xff]  ;;  %v224_v15 = vld [vmem:[%s1258_s1 + $0x40] sm:$0xff]  ;;  %v223_v17 = vld [vmem:[%s1258_s1 + $0x38] sm:$0xff]  ;;  %s893_s19 = scalar_lea.vmem %s892_s11, 512 }
  0x1a   : > { %763 = vmatprep.subr.mxu1 %v229_v5  ;;  %729 = vmatpush3.msra.mxu0 %v644_v4  ;;  %v637_v18 = vld [vmem:[%s1258_s1 + $0xb0] sm:$0xff]  ;;  %v636_v20 = vld [vmem:[%s1258_s1 + $0xa8] sm:$0xff]  ;;  %v635_v22 = vld [vmem:[%s1258_s1 + $0xa0] sm:$0xff] }
  0x1b   : > { %764 = vmatpush3.msra.mxu1 %v229_v5  ;;  %730 = vmatprep.subr.mxu0 %v643_v6  ;;  %v222_v19 = vld [vmem:[%s1258_s1 + $0x30] sm:$0xff]  ;;  %v221_v21 = vld [vmem:[%s1258_s1 + $0x28] sm:$0xff]  ;;  %v220_v23 = vld [vmem:[%s1258_s1 + $0x20] sm:$0xff] }
  0x1c   : > { %765 = vmatprep.subr.mxu1 %v228_v7  ;;  %731 = vmatpush3.msra.mxu0 %v643_v6  ;;  %v634_v24 = vld [vmem:[%s1258_s1 + $0x98] sm:$0xff]  ;;  %v633_v26 = vld [vmem:[%s1258_s1 + $0x90] sm:$0xff]  ;;  %v632_v28 = vld [vmem:[%s1258_s1 + $0x88] sm:$0xff] }
  0x1d   : > { %766 = vmatpush3.msra.mxu1 %v228_v7  ;;  %732 = vmatprep.subr.mxu0 %v642_v8  ;;  %v219_v25 = vld [vmem:[%s1258_s1 + $0x18] sm:$0xff]  ;;  %v218_v27 = vld [vmem:[%s1258_s1 + $0x10] sm:$0xff]  ;;  %v217_v29 = vld [vmem:[%s1258_s1 + $0x8] sm:$0xff] }
  0x1e   : > { %767 = vmatprep.subr.mxu1 %v227_v9  ;;  %733 = vmatpush3.msra.mxu0 %v642_v8  ;;  %v631_v30 = vld [vmem:[%s1258_s1 + $0x80] sm:$0xff]  ;;  %v233_v34 = vld [vmem:[%s1138_s18 + $0x9] sm:$0xff]  ;;  %v662_v36 = vld [vmem:[%s1258_s1 + $0x178] sm:$0xff] }
  0x1f   : > { %768 = vmatpush3.msra.mxu1 %v227_v9  ;;  %734 = vmatprep.subr.mxu0 %v641_v10  ;;  %v216_v31 = vld [vmem:[%s1258_s1] sm:$0xff]  ;;  %v215_v35 = vld [vmem:[%s1138_s18 + $0x8] sm:$0xff]  ;;  %v661_v38 = vld [vmem:[%s1258_s1 + $0x170] sm:$0xff] }
  0x20   : > { %769 = vmatprep.subr.mxu1 %v226_v11  ;;  %735 = vmatpush3.msra.mxu0 %v641_v10  ;;  %v232_v32 = vld [vmem:[%s1138_s18 + $0x1] sm:$0xff]  ;;  %v658_v41 = vld [vmem:[%s1258_s1 + $0x158] sm:$0xff]  ;;  %v657_v42 = vld [vmem:[%s1258_s1 + $0x150] sm:$0xff] }
  0x21   : > { %770 = vmatpush3.msra.mxu1 %v226_v11  ;;  %736 = vmatprep.subr.mxu0 %v640_v12  ;;  %v214_v33 = vld [vmem:[%s1138_s18] sm:$0xff]  ;;  %v660_v39 = vld [vmem:[%s1258_s1 + $0x168] sm:$0xff]  ;;  %v654_v45 = vld [vmem:[%s1258_s1 + $0x138] sm:$0xff] }
  0x22   : > { %771 = vmatprep.subr.mxu1 %v225_v13  ;;  %737 = vmatpush3.msra.mxu0 %v640_v12  ;;  %v401_v37 = vld [vmem:[%s1138_s18 + $0x2] sm:$0xff]  ;;  %v653_v46 = vld [vmem:[%s1258_s1 + $0x130] sm:$0xff]  ;;  %v650_v49 = vld [vmem:[%s1258_s1 + $0x118] sm:$0xff] }
  0x23   : > { %772 = vmatpush3.msra.mxu1 %v225_v13  ;;  %738 = vmatprep.subr.mxu0 %v639_v14  ;;  %v659_v40 = vld [vmem:[%s1258_s1 + $0x160] sm:$0xff]  ;;  %v656_v43 = vld [vmem:[%s1258_s1 + $0x148] sm:$0xff]  ;;  %v649_v50 = vld [vmem:[%s1258_s1 + $0x110] sm:$0xff] }
  0x24   : > { %773 = vmatprep.subr.mxu1 %v224_v15  ;;  %739 = vmatpush3.msra.mxu0 %v639_v14  ;;  %v655_v44 = vld [vmem:[%s1258_s1 + $0x140] sm:$0xff]  ;;  %v652_v47 = vld [vmem:[%s1258_s1 + $0x128] sm:$0xff] }
  0x25   : > { %774 = vmatpush3.msra.mxu1 %v224_v15  ;;  %740 = vmatprep.subr.mxu0 %v638_v16  ;;  %v651_v48 = vld [vmem:[%s1258_s1 + $0x120] sm:$0xff]  ;;  %v648_v51 = vld [vmem:[%s1258_s1 + $0x108] sm:$0xff] }
  0x26   : > { %775 = vmatprep.subr.mxu1 %v223_v17  ;;  %741 = vmatpush3.msra.mxu0 %v638_v16  ;;  %v647_v52 = vld [vmem:[%s1258_s1 + $0x100] sm:$0xff]  ;;  %v402_v53 = vld [vmem:[%s1138_s18 + $0xa] sm:$0xff]  ;;  %s201_s18 = scalar_lea.vmem [#allocation2], %s629_s28 }
  0x27   : > { %776 = vmatpush3.msra.mxu1 %v223_v17  ;;  %742 = vmatprep.subr.mxu0 %v637_v18  ;;  %v663_v60 = vld [vmem:[%s1259_s2] ss:$0 sm:$0xff]  ;;  %s523_s4 = sshll.u32 %s201_s18, 4  ;;  %s1205_s4 = int_to_ptr.vmem [resolvable:$true] %s523_s4 }
  0x28   : > { %777 = vmatprep.subr.mxu1 %v222_v19  ;;  %743 = vmatpush3.msra.mxu0 %v637_v18  ;;  %s887_s10 = scalar_lea.vmem %s1205_s4, 256  ;;  %p894_p1 = scmp.lt.s32.totalorder %s1205_s4, %s892_s11 }
  0x29   : > { %778 = vmatpush3.msra.mxu1 %v222_v19  ;;  %744 = vmatprep.subr.mxu0 %v636_v20  ;;  %p888_p12 = scmp.ne.s32.totalorder %s1205_s4, %s887_s10  ;;  %p895_p2 = scmp.lt.s32.totalorder %s893_s19, %s887_s10 }
  0x2a   : > { %779 = vmatprep.subr.mxu1 %v221_v21  ;;  %745 = vmatpush3.msra.mxu0 %v636_v20 }
  0x2b   : > { %780 = vmatpush3.msra.mxu1 %v221_v21  ;;  %746 = vmatprep.subr.mxu0 %v635_v22  ;;  %p889_p13 = pnand %p888_p12, %p1028_p4  ;;  %p896_p3 = por %p895_p2, %p894_p1 }
  0x2c   : > { %781 = vmatprep.subr.mxu1 %v220_v23  ;;  %747 = vmatpush3.msra.mxu0 %v635_v22 }
  0x2d   : > { %782 = vmatpush3.msra.mxu1 %v220_v23  ;;  %748 = vmatprep.subr.mxu0 %v634_v24  ;;  %p890_p0 = pneg %p889_p13 }
  0x2e   : > { %783 = vmatprep.subr.mxu1 %v219_v25  ;;  %749 = vmatpush3.msra.mxu0 %v634_v24 }
  0x2f   : > { %784 = vmatpush3.msra.mxu1 %v219_v25  ;;  %750 = vmatprep.subr.mxu0 %v633_v26  ;;  %p897_p5 = pnand %p896_p3, %p890_p0 }
  0x30   : > { %785 = vmatprep.subr.mxu1 %v218_v27  ;;  %751 = vmatpush3.msra.mxu0 %v633_v26 }
  0x31   : > { %786 = vmatpush3.msra.mxu1 %v218_v27  ;;  %752 = vmatprep.subr.mxu0 %v632_v28 }
  0x32   : > { %787 = vmatprep.subr.mxu1 %v217_v29  ;;  %753 = vmatpush3.msra.mxu0 %v632_v28 }
  0x33   : > { %788 = vmatpush3.msra.mxu1 %v217_v29  ;;  %754 = vmatprep.subr.mxu0 %v631_v30 }
  0x34   : > { %789 = vmatprep.subr.mxu1 %v216_v31  ;;  %755 = vmatpush3.msra.mxu0 %v631_v30 }
  0x35   : > { %756 = vmatprep.mubr.f32.mxu0 %v232_v32  ;;  %790 = vmatpush3.msra.mxu1 %v216_v31 }
  0x36   : > { %791 = vmatprep.mubr.f32.mxu1 %v214_v33  ;;  %757 = vmatmul.mubr.f32.vlgmr.msra.gmra.mxu0 %v233_v34 }
  0x37   : > { %792 = vmatmul.mubr.f32.vlgmr.msra.gmra.mxu1 %v215_v35  ;;  %794 = vmatprep.subr.mxu0 %v662_v36 }
  0x38   : > { %826 = vmatprep.mubr.f32.mxu0 %v401_v37  ;;  %795 = vmatpush3.msra.mxu0 %v662_v36 }
  0x39   : > { %796 = vmatprep.subr.mxu0 %v661_v38 }
  0x3a   : > { %797 = vmatpush3.msra.mxu0 %v661_v38 }
  0x3b   : > { %798 = vmatprep.subr.mxu0 %v660_v39 }
  0x3c   : > { %799 = vmatpush3.msra.mxu0 %v660_v39 }
  0x3d   : > { %800 = vmatprep.subr.mxu0 %v659_v40 }
  0x3e   : > { %801 = vmatpush3.msra.mxu0 %v659_v40 }
  0x3f   : > { %802 = vmatprep.subr.mxu0 %v658_v41 }
  0x40   : > { %803 = vmatpush3.msra.mxu0 %v658_v41 }
  0x41   : > { %804 = vmatprep.subr.mxu0 %v657_v42 }
  0x42   : > { %805 = vmatpush3.msra.mxu0 %v657_v42 }
  0x43   : > { %806 = vmatprep.subr.mxu0 %v656_v43 }
  0x44   : > { %807 = vmatpush3.msra.mxu0 %v656_v43 }
  0x45   : > { %808 = vmatprep.subr.mxu0 %v655_v44 }
  0x46   : > { %809 = vmatpush3.msra.mxu0 %v655_v44 }
  0x47   : > { %810 = vmatprep.subr.mxu0 %v654_v45 }
  0x48   : > { %811 = vmatpush3.msra.mxu0 %v654_v45 }
  0x49   : > { %812 = vmatprep.subr.mxu0 %v653_v46 }
  0x4a   : > { %813 = vmatpush3.msra.mxu0 %v653_v46 }
  0x4b   : > { %814 = vmatprep.subr.mxu0 %v652_v47 }
  0x4c   : > { %815 = vmatpush3.msra.mxu0 %v652_v47 }
  0x4d   : > { %816 = vmatprep.subr.mxu0 %v651_v48 }
  0x4e   : > { %817 = vmatpush3.msra.mxu0 %v651_v48 }
  0x4f   : > { %818 = vmatprep.subr.mxu0 %v650_v49 }
  0x50   : > { %819 = vmatpush3.msra.mxu0 %v650_v49 }
  0x51   : > { %820 = vmatprep.subr.mxu0 %v649_v50 }
  0x52   : > { %821 = vmatpush3.msra.mxu0 %v649_v50 }
  0x53   : > { %822 = vmatprep.subr.mxu0 %v648_v51 }
  0x54   : > { %823 = vmatpush3.msra.mxu0 %v648_v51 }
  0x55   : > { %824 = vmatprep.subr.mxu0 %v647_v52 }
  0x56   : > { %825 = vmatpush3.msra.mxu0 %v647_v52 }
  0x57   : > { %827 = vmatmul.mubr.f32.vlgmr.msra.gmra.mxu0 %v402_v53 }
  0xf6   : > { %v758_v54 = vpop.f32.mrf.mxu0 }
  0xf7   : > { %v793_v55 = vpop.f32.mrf.mxu1 }
  0xf8   : > { %v317_v56 = vpop.f32.mrf.mxu0  ;;  %v398_v58 = vadd.f32 %v793_v55, %v758_v54 }
  0xf9   : > { %v392_v57 = vpop.f32.mrf.mxu1 }
  0xfa   : > { %v393_v61 = vadd.f32 %v392_v57, %v317_v56 }
 0x117   : > { %v828_v59 = vpop.f32.mrf.mxu0 }
 0x118   : > { %v496_v62 = vadd.f32 %v828_v59, %v398_v58 }
 0x119   : > { %v486_v63 = vpop.f32.mrf.mxu0 }
 0x11a   : > { %v505_v0 = vadd.f32 %v663_v60, %v496_v62  ;;  %v495_v1 = vadd.f32 %v486_v63, %v393_v61 }
 0x11c   : > { %507 = vst [vmem:[%s201_s18 + $0x8] sm:$0xff] %v505_v0  ;;  %v504_v2 = vadd.f32 %v663_v60, %v495_v1 }
 0x11e   : > { %506 = vst [vmem:[%s201_s18] sm:$0xff] %v504_v2 }
 0x11f   : > { %900 = shalt.err (!%p897_p5)
}
 0x120   : > { %s901_s21 = scalar_lea.hbm %s1210_s8, 256  ;;  %s905_s27 = scalar_lea.hbm %s1260_s3, 512 }
 0x121   : > { %p902_p6 = scmp.ne.s32.totalorder %s1210_s8, %s901_s21  ;;  %p906_p10 = scmp.lt.s32.totalorder %s1210_s8, %s1260_s3 }
 0x122   : > { %p907_p11 = scmp.lt.s32.totalorder %s905_s27, %s901_s21 }
 0x123   : > { %p903_p7 = pnand %p902_p6, %p1028_p4 }
 0x124   : > { %p908_p12 = por %p907_p11, %p906_p10 }
 0x125   : > { %p904_p9 = pneg %p903_p7 }
 0x127   : > { %p909_p13 = pnand %p908_p12, %p904_p9 }
 0x129   : > { %912 = shalt.err (!%p909_p13)
}
 0x12a   : > { %s966_s30 = smov 128   ;;  %s967_s18 = smov 8  }
 0x12b   : > { %830 = dma.vmem_to_hbm [thread:$0]  (%p1028_p4), %s1205_s4, 256, %s1210_s8, %s1212_s9, %s966_s30, %s966_s30, %s967_s18  }
 0x12c PF: > { %p836_p0 = scmp.ge.s32.totalorder %s963_s17, 2  ;;  %s538_s5 = sand.u32 1, %s943_s12  }
 0x12d   : > { %s539_s6 = scalar_lea.sflag [#allocation3], %s538_s5 }
 0x12e   : > { %p833_p1 = pnand %p836_p0, %p1035_p8 }
 0x130   : > { %p834_p2 = pneg %p833_p1 }
 0x132   : > { %938 = dma.done.wait (%p834_p2), %s539_s6, 256  }
 0x133   : > { %940 = vsyncadd (%p834_p2), %s539_s6, 4294967040  ;;  %s16_s17 = sadd.s32 1, %s963_s17   ;;  %s1263_s12 = smov %s947_s13 }
 0x134   : > { %p13_p3 = scmp.ge.s32.totalorder %s16_s17, 4   ;;  %s1264_s13 = smov %s951_s14 }
 0x135   : > { %s1265_s14 = smov %s1041_s25  ;;  %s1266_s15 = smov %s959_s16 }
 0x136   : > { %s1267_s16 = smov %s1269_s20  ;;  %15 = sbr.rel (!%p13_p3) target bundleno = 4 (0x4), region = 75 }
 0x13b   :  { %544 = vsyncpa [#allocation3], 1 }
 0x13c   :  { %546 = vsyncpa [#allocation3 + $0x1], 1 }

</bundles_post_ra>
